<compile_context>
chip_gen: v5e
topology: v5e:2x2
jax: 0.10.0
libtpu: 0.0.40
codegen_flags: <defaults>
</compile_context>

<pallas_src>
import functools

import jax
import jax.numpy as jnp
from jax.experimental import pallas as pl
from jax.experimental.pallas import tpu as pltpu

LANES = 128         # vreg lane width
SUBLANES = 8        # f32 sublanes per vreg
_CHUNK_ROWS = 1024  # rows folded per unrolled sub-step (bounds VMEM temps)


def _round_up(x, m):
    return (x + m - 1) // m * m


def _default_num_partials():
    """2 on v7x-class chips (2 TensorCores / chip), else 1 (v5e / v6e)."""
    try:
        kind = jax.devices()[0].device_kind.lower()
    except Exception:
        return 1
    # TODO(synk): if a v7x trace shows the "parallel" axis serialized, switch
    # to an explicit core split via pltpu.CORE_PARALLEL / pl.core_map.
    return 2 if "v7" in kind else 1


def _plan(size, num_partials, max_rows_per_block):
    """Pick (num_partials, blocks_per_partial, rows_per_block, total_rows).

    Minimal-step policy: fewest grid steps such that each block is at most
    `max_rows_per_block` rows, so zero-padding waste is at most one block and
    per-step overhead stays amortized.
    """
    rows = pl.cdiv(size, LANES)
    if num_partials is None:
        num_partials = _default_num_partials()
        if rows < 2048:            # too little work to be worth a core split
            num_partials = 1
    num_partials = max(1, min(num_partials, max(1, rows // SUBLANES)))
    rows_per_partial = pl.cdiv(rows, num_partials)
    blocks_per_partial = max(1, pl.cdiv(rows_per_partial, max_rows_per_block))
    rows_per_block = _round_up(pl.cdiv(rows_per_partial, blocks_per_partial),
                               SUBLANES)
    total_rows = num_partials * blocks_per_partial * rows_per_block
    return num_partials, blocks_per_partial, rows_per_block, total_rows


def _to_slab(param, total_rows):
    """Zero-pad the 1-D param and reshape to a lane-dense (total_rows, 128) slab."""
    size = param.shape[0]
    padded = total_rows * LANES
    p = param.astype(jnp.float32)
    if padded != size:
        p = jnp.pad(p, (0, padded - size))
    return p.reshape(total_rows, LANES)


def _quadratic_kernel(p_ref, o_ref, *, rows_per_block):
    """Fold one (rows_per_block, 128) param block into the (8, 128) accumulator.

    Accumulates sum over the block of ((i+1) * param_i)^2.  The element index
    i is regenerated in-kernel from the grid position, so `scale` is never
    streamed from HBM.  o_ref's block index depends only on grid axis 0, so it
    stays resident across the "arbitrary" reduction axis 1.
    """
    c = pl.program_id(0)                   # partial (core) index
    j = pl.program_id(1)                   # reduction step within the partial

    @pl.when(j == 0)
    def _init():
        o_ref[...] = jnp.zeros_like(o_ref)

    block_row0 = (c * pl.num_programs(1) + j) * rows_per_block

    acc = jnp.zeros((SUBLANES, LANES), jnp.float32)
    # Static (trace-time) loop over sub-chunks: keeps every intermediate at
    # <= _CHUNK_ROWS x 128 x 4 B, so VMEM pressure is tiny even for 4 MiB
    # blocks; all work here is plain VPU vmul/vadd hidden under the DMA.
    for r0 in range(0, rows_per_block, _CHUNK_ROWS):
        nrows = min(_CHUNK_ROWS, rows_per_block - r0)        # multiple of 8
        row_i = jax.lax.broadcasted_iota(jnp.int32, (nrows, LANES), 0)
        lane_i = jax.lax.broadcasted_iota(jnp.int32, (nrows, LANES), 1)
        # Element index + 1 (exact in int32; the f32 convert rounds the same
        # way the reference's float32 arange does).
        idx1 = (block_row0 + r0 + row_i) * LANES + lane_i + 1
        u = idx1.astype(jnp.float32) * p_ref[r0:r0 + nrows, :]
        # (nrows, 128) -> (nrows/8, 8, 128) splits the sublane axis exactly at
        # the (8, 128) tile boundary: the fold is pure vreg adds.
        acc = acc + jnp.sum((u * u).reshape(-1, SUBLANES, LANES), axis=0)

    o_ref[...] += acc


def _pallas_weighted_sq_sum(param2d, *, size, num_partials, blocks_per_partial,
                            rows_per_block):
    """sum_i ((i+1) * param_i)^2 over the padded (total_rows, 128) slab."""
    kernel = functools.partial(_quadratic_kernel, rows_per_block=rows_per_block)
    partials = pl.pallas_call(
        kernel,
        out_shape=jax.ShapeDtypeStruct((num_partials * SUBLANES, LANES),
                                       jnp.float32),
        grid=(num_partials, blocks_per_partial),
        in_specs=[
            pl.BlockSpec((rows_per_block, LANES),
                         lambda c, j: (c * blocks_per_partial + j, 0)),
        ],
        # Lane-dense (8, 128) accumulator block per partial: one unmasked
        # store per partial, never a masked (1, 1) scalar store per step.
        out_specs=pl.BlockSpec((SUBLANES, LANES), lambda c, j: (c, 0)),
        compiler_params=pltpu.CompilerParams(
            # Axis 0 shards across TensorCores on v7x (no-op when it has
            # extent 1, which is the default on single-core v5e/v6e); axis 1
            # is the sequential reduction over blocks.
            dimension_semantics=("parallel", "arbitrary"),
            vmem_limit_bytes=32 * 1024 * 1024,
        ),
        cost_estimate=pl.CostEstimate(
            flops=3 * size,
            transcendentals=0,
            bytes_accessed=param2d.size * 4
            + num_partials * SUBLANES * LANES * 4,
        ),
    )(param2d)
    # Final tiny reduce of the (num_partials*8, 128) partials in XLA (fused
    # with the inv_norm multiply in the caller).
    return jnp.sum(partials)


def _forward_from_slab(param2d, inv_norm, *, size, num_partials,
                       blocks_per_partial, rows_per_block):
    s = _pallas_weighted_sq_sum(param2d, size=size, num_partials=num_partials,
                                blocks_per_partial=blocks_per_partial,
                                rows_per_block=rows_per_block)
    return s * inv_norm


def quadratic_forward(param, scale, *, num_partials=None,
                      max_rows_per_block=8192, min_pallas_size=8192):
    """einsum('a,a,a->', param, param, scale) for the module's specific scale.

    Convenience path that pads per call; Model below builds the padded slab
    once in __init__ and avoids this per-call copy entirely.
    """
    size = param.shape[0]
    param = param.astype(jnp.float32)
    scale = scale.astype(jnp.float32)
    if size < min_pallas_size:
        # Tiny problem: kernel launch + DMA setup dwarfs ~3*size FLOPs.
        return jnp.sum(param * param * scale)
    inv_norm = scale[0]                     # scale[0] == 1^2 / norm == 1/norm
    np_, bpp, rpb, total_rows = _plan(size, num_partials, max_rows_per_block)
    slab = _to_slab(param, total_rows)
    return _forward_from_slab(slab, inv_norm, size=size, num_partials=np_,
                              blocks_per_partial=bpp, rows_per_block=rpb)


class Model:
    """JAX/Pallas equivalent of the PyTorch Model(size).

    forward(inp) ignores `inp` and returns
    einsum('a,a,a->', param, param, scale) with
    scale = F.normalize((arange(size)+1)^2, dim=0).
    """

    def __init__(self, size, key, *, num_partials=None,
                 max_rows_per_block=8192, min_pallas_size=8192):
        self.size = size
        self.param = jax.random.normal(key, (size,), dtype=jnp.float32)
        sq = jnp.square(jnp.arange(size, dtype=jnp.float32) + 1.0)
        # F.normalize(..., dim=0) is L2 normalization with eps=1e-12.
        norm = jnp.maximum(jnp.sqrt(jnp.sum(sq * sq)), 1e-12)
        self.scale = sq / norm              # kept for reference / parity checks
        self.inv_norm = (1.0 / norm).astype(jnp.float32)

        self.use_pallas = size >= min_pallas_size
        if self.use_pallas:
            np_, bpp, rpb, total_rows = _plan(size, num_partials,
                                              max_rows_per_block)
            # Pad + reshape ONCE here (persistent buffer); the forward pass
            # never re-pads, so the kernel's own DMA is the only HBM traffic.
            self.param2d = _to_slab(self.param, total_rows)
            self._fwd = jax.jit(functools.partial(
                _forward_from_slab, size=size, num_partials=np_,
                blocks_per_partial=bpp, rows_per_block=rpb))

    def __call__(self, inp):
        # `inp` is unused, matching the PyTorch forward.
        del inp
        if not self.use_pallas:
            return jnp.sum(self.param * self.param * self.scale)
        return self._fwd(self.param2d, self.inv_norm)


if __name__ == "__main__":
    key = jax.random.PRNGKey(0)
    k_small, k_mid, k_big = jax.random.split(key, 3)

    # 1) Tiny size (PyTorch-default-like regime): XLA fallback path.
    m_small = Model(32, k_small)
    inp = jax.random.normal(k_small, (32,), dtype=jnp.float32)   # unused
    out_s = jax.block_until_ready(m_small(inp))
    ref_s = jnp.einsum("a,a,a->", m_small.param, m_small.param, m_small.scale)
    assert jnp.allclose(out_s, ref_s, rtol=1e-5, atol=1e-6), (out_s, ref_s)

    # 2) Ragged mid size: Pallas path, auto geometry (single partial, single
    #    block), exercises the zero-padded tail handled inside the slab.
    m_mid = Model(50_000, k_mid)
    out_m = jax.block_until_ready(m_mid(None))
    ref_m = jnp.einsum("a,a,a->", m_mid.param, m_mid.param, m_mid.scale)
    assert jnp.allclose(out_m, ref_m, rtol=5e-4, atol=1e-5), (out_m, ref_m)

    # 3) Larger ragged size with forced multi-step, 2-partial geometry
    #    (grid = (2, 3)): exercises the "parallel" core axis, the multi-block
    #    "arbitrary" reduction and the output-resident accumulator init.
    m_big = Model(600_003, k_big, num_partials=2, max_rows_per_block=1024)
    out_b = jax.block_until_ready(m_big(None))
    ref_b = jnp.einsum("a,a,a->", m_big.param, m_big.param, m_big.scale)
    assert jnp.allclose(out_b, ref_b, rtol=5e-4, atol=1e-5), (out_b, ref_b)

    print("KERNEL_OK")
</pallas_src>

<mosaic_0001>
module attributes {stable_mosaic.version = 11 : i64} {
  func.func @_quadratic_kernel(%arg0: i32, %arg1: i32, %arg2: memref<392x128xf32, #tpu.memory_space<vmem>>, %arg3: memref<8x128xf32, #tpu.memory_space<vmem>>) attributes {dimension_semantics = [#tpu.dimension_semantics<parallel>, #tpu.dimension_semantics<arbitrary>], iteration_bounds = array<i64: 1, 1>, scalar_prefetch = 0 : i64, scratch_operands = 0 : i64, tpu.core_type = #tpu.core_type<tc>, window_params = [{transform_indices = @transform_0, window_bounds = array<i64: 392, 128>}, {transform_indices = @transform_1, window_bounds = array<i64: 8, 128>}]} {
    %c0_i32 = arith.constant 0 : i32
    %0 = arith.cmpi eq, %arg1, %c0_i32 : i32
    %1 = arith.extui %0 : i1 to i32
    %c0_i32_0 = arith.constant 0 : i32
    %2 = arith.cmpi ne, %1, %c0_i32_0 : i32
    scf.if %2 {
      %cst_9 = arith.constant 0.000000e+00 : f32
      %27 = vector.broadcast %cst_9 : f32 to vector<8x128xf32>
      %c0_10 = arith.constant 0 : index
      %c0_11 = arith.constant 0 : index
      %28 = vector.load %arg3[%c0_10, %c0_11] : memref<8x128xf32, #tpu.memory_space<vmem>>, vector<8x128xf32>
      tpu.vector_store %arg3[%c0_10, %c0_11], %27 {strides = array<i32>} : memref<8x128xf32, #tpu.memory_space<vmem>>, vector<8x128xf32>,
    } else {
    }
    %c1_i32 = arith.constant 1 : i32
    %3 = arith.muli %arg0, %c1_i32 : i32
    %4 = arith.addi %3, %arg1 : i32
    %c392_i32 = arith.constant 392 : i32
    %5 = arith.muli %4, %c392_i32 : i32
    %cst = arith.constant 0.000000e+00 : f32
    %6 = vector.broadcast %cst : f32 to vector<8x128xf32>
    %7 = tpu.iota {dimensions = array<i32: 0>} : vector<392x128xi32>
    %8 = tpu.iota {dimensions = array<i32: 1>} : vector<392x128xi32>
    %c0_i32_1 = arith.constant 0 : i32
    %9 = arith.addi %5, %c0_i32_1 : i32
    %10 = vector.broadcast %9 : i32 to vector<392x128xi32>
    %11 = arith.addi %10, %7 : vector<392x128xi32>
    %c128_i32 = arith.constant 128 : i32
    %12 = vector.broadcast %c128_i32 : i32 to vector<392x128xi32>
    %13 = arith.muli %11, %12 : vector<392x128xi32>
    %14 = arith.addi %13, %8 : vector<392x128xi32>
    %c1_i32_2 = arith.constant 1 : i32
    %15 = vector.broadcast %c1_i32_2 : i32 to vector<392x128xi32>
    %16 = arith.addi %14, %15 : vector<392x128xi32>
    %17 = arith.sitofp %16 : vector<392x128xi32> to vector<392x128xf32>
    %c0 = arith.constant 0 : index
    %c0_3 = arith.constant 0 : index
    %18 = vector.load %arg2[%c0, %c0_3] : memref<392x128xf32, #tpu.memory_space<vmem>>, vector<392x128xf32>
    %19 = arith.mulf %17, %18 : vector<392x128xf32>
    %20 = arith.mulf %19, %19 : vector<392x128xf32>
    %21 = vector.shape_cast %20 : vector<392x128xf32> to vector<49x8x128xf32>
    %cst_4 = arith.constant dense<0.000000e+00> : vector<8x128xf32>
    %22 = vector.multi_reduction <add>, %21, %cst_4 [0] : vector<49x8x128xf32> to vector<8x128xf32>
    %23 = arith.addf %6, %22 : vector<8x128xf32>
    %c0_5 = arith.constant 0 : index
    %c0_6 = arith.constant 0 : index
    %24 = vector.load %arg3[%c0_5, %c0_6] : memref<8x128xf32, #tpu.memory_space<vmem>>, vector<8x128xf32>
    %25 = arith.addf %24, %23 : vector<8x128xf32>
    %c0_7 = arith.constant 0 : index
    %c0_8 = arith.constant 0 : index
    %26 = vector.load %arg3[%c0_7, %c0_8] : memref<8x128xf32, #tpu.memory_space<vmem>>, vector<8x128xf32>
    tpu.vector_store %arg3[%c0_7, %c0_8], %25 {strides = array<i32>} : memref<8x128xf32, #tpu.memory_space<vmem>>, vector<8x128xf32>,
    return
  }
  func.func @transform_0(%arg0: i32, %arg1: i32) -> (i32, i32) {
    %c1_i32 = arith.constant 1 : i32
    %0 = arith.muli %arg0, %c1_i32 : i32
    %1 = arith.addi %0, %arg1 : i32
    %c0_i32 = arith.constant 0 : i32
    %c0_i32_0 = arith.constant 0 : i32
    return %1, %c0_i32 : i32, i32
  }
  func.func @transform_1(%arg0: i32, %arg1: i32) -> (i32, i32) {
    %c0_i32 = arith.constant 0 : i32
    %c0_i32_0 = arith.constant 0 : i32
    return %arg0, %c0_i32 : i32, i32
  }
}

</mosaic_0001>

<bundles_post_ra>
// kernel: _forward_from_slab.1
= control target key start
LH: loop header
LB: loop body
LE: loop exit
PB: predicated region body
PF: predicated region fallthrough
CT: control target
= control target key end

     0   :  { %6 = vsyncpa [#allocation3], 0  ;;  %s569_s9 = smov [#allocation2]   ;;  %s570_s11 = smov 128   ;;  %s738_s0 = inlined_call_operand.hbm [shape: f32[392,128], index: 0, kind: input, shape index: {}]   ;;  %s739_s1 = inlined_call_operand.vmem [shape: f32[8,128], index: 1, kind: output, shape index: {}]  }
   0x1   :  { %s15_s8 = sshll.u32 %s738_s0, 4  ;;  %s17_s10 = sshll.u32 %s569_s9, 4  ;;  %s16_s8 = int_to_ptr.hbm [resolvable:$true] %s15_s8  ;;  %s18_s10 = int_to_ptr.vmem [resolvable:$true] %s17_s10 }
   0x2   :  { %s571_s12 = smov 8  }
   0x3   :  { %23 = dma.hbm_to_vmem [thread:$0]  %s16_s8, 6272, %s18_s10, [#allocation3], %s570_s11, %s570_s11, %s571_s12  }
   0x4   :  { %567 = dma.done.wait [#allocation3], 6272  }
   0x5   :  { %568 = vsyncadd [#allocation3], 4294961024  ;;  %v37_v0 = vlaneseq }
   0x7   :  { %v585_v1 = vshrl.u32 %v37_v0, 7  ;;  %v589_v4 = vand.u32 127, %v37_v0 }
   0x9   :  { %v71_v2 = vadd.s32 264, %v585_v1  ;;  %v72_v3 = vadd.s32 272, %v585_v1  ;;  %v73_v5 = vadd.s32 280, %v585_v1  ;;  %v74_v6 = vadd.s32 288, %v585_v1 }
   0xa   :  { %v75_v7 = vadd.s32 296, %v585_v1  ;;  %v76_v8 = vadd.s32 304, %v585_v1  ;;  %v77_v9 = vadd.s32 312, %v585_v1  ;;  %v78_v10 = vadd.s32 320, %v585_v1 }
   0xb   :  { %v79_v11 = vadd.s32 328, %v585_v1  ;;  %v80_v12 = vadd.s32 336, %v585_v1  ;;  %v81_v13 = vadd.s32 344, %v585_v1  ;;  %v82_v14 = vadd.s32 352, %v585_v1 }
   0xc   :  { %v83_v15 = vadd.s32 360, %v585_v1  ;;  %v84_v16 = vadd.s32 368, %v585_v1  ;;  %v85_v17 = vadd.s32 376, %v585_v1  ;;  %v86_v18 = vadd.s32 384, %v585_v1 }
   0xd   :  { %v172_v19 = vmul.u32 128, %v71_v2  ;;  %v173_v20 = vmul.u32 128, %v72_v3  ;;  %v174_v21 = vmul.u32 128, %v73_v5  ;;  %v175_v22 = vmul.u32 128, %v74_v6 }
   0xe   :  { %v176_v23 = vmul.u32 128, %v75_v7  ;;  %v177_v24 = vmul.u32 128, %v76_v8  ;;  %v178_v25 = vmul.u32 128, %v77_v9  ;;  %v179_v26 = vmul.u32 128, %v78_v10 }
   0xf   :  { %v180_v27 = vmul.u32 128, %v79_v11  ;;  %v181_v28 = vmul.u32 128, %v80_v12  ;;  %v182_v29 = vmul.u32 128, %v81_v13  ;;  %v183_v30 = vmul.u32 128, %v82_v14 }
  0x10   :  { %v184_v31 = vmul.u32 128, %v83_v15  ;;  %v185_v32 = vmul.u32 128, %v84_v16  ;;  %v186_v33 = vmul.u32 128, %v85_v17  ;;  %v187_v34 = vmul.u32 128, %v86_v18 }
  0x11   :  { %v606_v35 = vadd.s32 %v172_v19, %v589_v4  ;;  %v609_v36 = vadd.s32 %v173_v20, %v589_v4  ;;  %v612_v37 = vadd.s32 %v174_v21, %v589_v4  ;;  %v615_v38 = vadd.s32 %v175_v22, %v589_v4  ;;  %v335_v19 = vld [vmem:[#allocation2] sm:$0xff]  ;;  %v336_v20 = vld [vmem:[#allocation2 + $0x8] sm:$0xff] }
  0x12   :  { %v618_v39 = vadd.s32 %v176_v23, %v589_v4  ;;  %v621_v40 = vadd.s32 %v177_v24, %v589_v4  ;;  %v624_v41 = vadd.s32 %v178_v25, %v589_v4  ;;  %v627_v42 = vadd.s32 %v179_v26, %v589_v4 }
  0x13   :  { %v630_v43 = vadd.s32 %v180_v27, %v589_v4  ;;  %v633_v44 = vadd.s32 %v181_v28, %v589_v4  ;;  %v636_v45 = vadd.s32 %v182_v29, %v589_v4  ;;  %v639_v46 = vadd.s32 %v183_v30, %v589_v4  ;;  %v337_v28 = vld [vmem:[#allocation2 + $0x10] sm:$0xff] }
  0x14   :  { %v642_v47 = vadd.s32 %v184_v31, %v589_v4  ;;  %v645_v48 = vadd.s32 %v185_v32, %v589_v4  ;;  %v648_v49 = vadd.s32 %v186_v33, %v589_v4  ;;  %v651_v50 = vadd.s32 %v187_v34, %v589_v4 }
  0x15   :  { %v39_v51 = vadd.s32 8, %v585_v1  ;;  %v40_v52 = vadd.s32 16, %v585_v1  ;;  %v41_v53 = vadd.s32 24, %v585_v1  ;;  %v139_v54 = vmul.u32 128, %v585_v1 }
  0x16   :  { %v42_v56 = vadd.s32 32, %v585_v1  ;;  %v43_v58 = vadd.s32 40, %v585_v1  ;;  %v44_v62 = vadd.s32 48, %v585_v1  ;;  %v45_v2 = vadd.s32 56, %v585_v1 }
  0x17   :  { %v140_v55 = vmul.u32 128, %v39_v51  ;;  %v141_v57 = vmul.u32 128, %v40_v52  ;;  %v142_v59 = vmul.u32 128, %v41_v53  ;;  %v188_v60 = vadd.s32 %v139_v54, %v589_v4  ;;  %v338_v51 = vld [vmem:[#allocation2 + $0x18] sm:$0xff] }
  0x18   :  { %v143_v63 = vmul.u32 128, %v42_v56  ;;  %v144_v3 = vmul.u32 128, %v43_v58  ;;  %v46_v8 = vadd.s32 64, %v585_v1  ;;  %v145_v9 = vmul.u32 128, %v44_v62 }
  0x19   :  { %v189_v61 = vadd.s32 %v140_v55, %v589_v4  ;;  %v190_v0 = vadd.s32 %v141_v57, %v589_v4  ;;  %v191_v5 = vadd.s32 %v142_v59, %v589_v4  ;;  %v237_v6 = vadd.s32 1, %v188_v60  ;;  %v339_v60 = vld [vmem:[#allocation2 + $0x20] sm:$0xff] }
  0x1a   :  { %v192_v10 = vadd.s32 %v143_v63, %v589_v4  ;;  %v47_v12 = vadd.s32 72, %v585_v1  ;;  %v146_v13 = vmul.u32 128, %v45_v2  ;;  %v193_v14 = vadd.s32 %v144_v3, %v589_v4 }
  0x1b   :  { %v238_v7 = vadd.s32 1, %v189_v61  ;;  %v239_v11 = vadd.s32 1, %v190_v0  ;;  %v240_v15 = vadd.s32 1, %v191_v5  ;;  %v286_v16 = vcvt.s32.f32 %v237_v6  ;;  %v340_v6 = vld [vmem:[#allocation2 + $0x28] sm:$0xff] }
  0x1c   :  { %v48_v18 = vadd.s32 80, %v585_v1  ;;  %v147_v21 = vmul.u32 128, %v46_v8  ;;  %v194_v22 = vadd.s32 %v145_v9, %v589_v4  ;;  %v241_v23 = vadd.s32 1, %v192_v10 }
  0x1d   :  { %v287_v17 = vcvt.s32.f32 %v238_v7  ;;  %v288_v24 = vcvt.s32.f32 %v239_v11  ;;  %v49_v25 = vadd.s32 88, %v585_v1  ;;  %v148_v26 = vmul.u32 128, %v47_v12 }
  0x1e   :  { %v195_v27 = vadd.s32 %v146_v13, %v589_v4  ;;  %v242_v29 = vadd.s32 1, %v193_v14  ;;  %v289_v30 = vcvt.s32.f32 %v240_v15  ;;  %v384_v31 = vmul.f32 %v335_v19, %v286_v16  ;;  %v341_v15 = vld [vmem:[#allocation2 + $0x30] sm:$0xff] }
  0x1f   :  { %v385_v32 = vmul.f32 %v336_v20, %v287_v17  ;;  %v50_v33 = vadd.s32 96, %v585_v1  ;;  %v149_v34 = vmul.u32 128, %v48_v18  ;;  %v196_v52 = vadd.s32 %v147_v21, %v589_v4 }
  0x20   :  { %v243_v53 = vadd.s32 1, %v194_v22  ;;  %v290_v54 = vcvt.s32.f32 %v241_v23  ;;  %v386_v55 = vmul.f32 %v337_v28, %v288_v24  ;;  %v51_v56 = vadd.s32 104, %v585_v1  ;;  %v342_v24 = vld [vmem:[#allocation2 + $0x38] sm:$0xff] }
  0x21   :  { %v150_v57 = vmul.u32 128, %v49_v25  ;;  %v197_v58 = vadd.s32 %v148_v26, %v589_v4  ;;  %v244_v59 = vadd.s32 1, %v195_v27  ;;  %v291_v61 = vcvt.s32.f32 %v242_v29 }
  0x22   :  { %v387_v62 = vmul.f32 %v338_v51, %v289_v30  ;;  %v433_v63 = vmul.f32 %v384_v31, %v384_v31  ;;  %v434_v0 = vmul.f32 %v385_v32, %v385_v32  ;;  %v52_v2 = vadd.s32 112, %v585_v1 }
  0x23   :  { %v151_v3 = vmul.u32 128, %v50_v33  ;;  %v198_v5 = vadd.s32 %v149_v34, %v589_v4  ;;  %v245_v7 = vadd.s32 1, %v196_v52  ;;  %v292_v8 = vcvt.s32.f32 %v243_v53  ;;  %v343_v33 = vld [vmem:[#allocation2 + $0x40] sm:$0xff] }
  0x24   :  { %v388_v9 = vmul.f32 %v339_v60, %v290_v54  ;;  %v435_v10 = vmul.f32 %v386_v55, %v386_v55  ;;  %v53_v11 = vadd.s32 120, %v585_v1  ;;  %v152_v12 = vmul.u32 128, %v51_v56 }
  0x25   :  { %v199_v13 = vadd.s32 %v150_v57, %v589_v4  ;;  %v246_v14 = vadd.s32 1, %v197_v58  ;;  %v293_v16 = vcvt.s32.f32 %v244_v59  ;;  %v389_v17 = vmul.f32 %v340_v6, %v291_v61  ;;  %v344_v58 = vld [vmem:[#allocation2 + $0x48] sm:$0xff] }
  0x26   :  { %v436_v18 = vmul.f32 %v387_v62, %v387_v62  ;;  %v482_v19 = vadd.f32 %v434_v0, %v433_v63  ;;  %v54_v20 = vadd.s32 128, %v585_v1  ;;  %v153_v21 = vmul.u32 128, %v52_v2 }
  0x27   :  { %v200_v22 = vadd.s32 %v151_v3, %v589_v4  ;;  %v247_v23 = vadd.s32 1, %v198_v5  ;;  %v294_v25 = vcvt.s32.f32 %v245_v7  ;;  %v390_v26 = vmul.f32 %v341_v15, %v292_v8  ;;  %v345_v5 = vld [vmem:[#allocation2 + $0x50] sm:$0xff] }
  0x28   :  { %v437_v27 = vmul.f32 %v388_v9, %v388_v9  ;;  %v483_v28 = vadd.f32 %v482_v19, %v435_v10  ;;  %v55_v29 = vadd.s32 136, %v585_v1  ;;  %v154_v30 = vmul.u32 128, %v53_v11 }
  0x29   :  { %v201_v31 = vadd.s32 %v152_v12, %v589_v4  ;;  %v248_v32 = vadd.s32 1, %v199_v13  ;;  %v295_v34 = vcvt.s32.f32 %v246_v14  ;;  %v391_v51 = vmul.f32 %v342_v24, %v293_v16  ;;  %v346_v14 = vld [vmem:[#allocation2 + $0x58] sm:$0xff] }
  0x2a   :  { %v438_v52 = vmul.f32 %v389_v17, %v389_v17  ;;  %v484_v53 = vadd.f32 %v483_v28, %v436_v18  ;;  %v56_v54 = vadd.s32 144, %v585_v1  ;;  %v155_v55 = vmul.u32 128, %v54_v20 }
  0x2b   :  { %v202_v56 = vadd.s32 %v153_v21, %v589_v4  ;;  %v249_v57 = vadd.s32 1, %v200_v22  ;;  %v296_v59 = vcvt.s32.f32 %v247_v23  ;;  %v392_v60 = vmul.f32 %v343_v33, %v294_v25  ;;  %v347_v23 = vld [vmem:[#allocation2 + $0x60] sm:$0xff] }
  0x2c   :  { %v439_v61 = vmul.f32 %v390_v26, %v390_v26  ;;  %v485_v62 = vadd.f32 %v484_v53, %v437_v27  ;;  %v57_v63 = vadd.s32 152, %v585_v1  ;;  %v156_v0 = vmul.u32 128, %v55_v29 }
  0x2d   :  { %v203_v2 = vadd.s32 %v154_v30, %v589_v4  ;;  %v250_v3 = vadd.s32 1, %v201_v31  ;;  %v297_v6 = vcvt.s32.f32 %v248_v32  ;;  %v393_v7 = vmul.f32 %v344_v58, %v295_v34  ;;  %v348_v32 = vld [vmem:[#allocation2 + $0x68] sm:$0xff] }
  0x2e   :  { %v440_v8 = vmul.f32 %v391_v51, %v391_v51  ;;  %v486_v9 = vadd.f32 %v485_v62, %v438_v52  ;;  %v58_v10 = vadd.s32 160, %v585_v1  ;;  %v157_v11 = vmul.u32 128, %v56_v54 }
  0x2f   :  { %v204_v12 = vadd.s32 %v155_v55, %v589_v4  ;;  %v251_v13 = vadd.s32 1, %v202_v56  ;;  %v298_v15 = vcvt.s32.f32 %v249_v57  ;;  %v394_v16 = vmul.f32 %v345_v5, %v296_v59  ;;  %v349_v57 = vld [vmem:[#allocation2 + $0x70] sm:$0xff] }
  0x30   :  { %v441_v17 = vmul.f32 %v392_v60, %v392_v60  ;;  %v487_v18 = vadd.f32 %v486_v9, %v439_v61  ;;  %v59_v19 = vadd.s32 168, %v585_v1  ;;  %v158_v20 = vmul.u32 128, %v57_v63 }
  0x31   :  { %v205_v21 = vadd.s32 %v156_v0, %v589_v4  ;;  %v252_v22 = vadd.s32 1, %v203_v2  ;;  %v299_v24 = vcvt.s32.f32 %v250_v3  ;;  %v395_v25 = vmul.f32 %v346_v14, %v297_v6  ;;  %v350_v3 = vld [vmem:[#allocation2 + $0x78] sm:$0xff] }
  0x32   :  { %v442_v26 = vmul.f32 %v393_v7, %v393_v7  ;;  %v488_v27 = vadd.f32 %v487_v18, %v440_v8  ;;  %v60_v28 = vadd.s32 176, %v585_v1  ;;  %v159_v29 = vmul.u32 128, %v58_v10 }
  0x33   :  { %v206_v30 = vadd.s32 %v157_v11, %v589_v4  ;;  %v253_v31 = vadd.s32 1, %v204_v12  ;;  %v300_v33 = vcvt.s32.f32 %v251_v13  ;;  %v396_v34 = vmul.f32 %v347_v23, %v298_v15  ;;  %v351_v13 = vld [vmem:[#allocation2 + $0x80] sm:$0xff] }
  0x34   :  { %v443_v51 = vmul.f32 %v394_v16, %v394_v16  ;;  %v489_v52 = vadd.f32 %v488_v27, %v441_v17  ;;  %v61_v53 = vadd.s32 184, %v585_v1  ;;  %v160_v54 = vmul.u32 128, %v59_v19 }
  0x35   :  { %v207_v55 = vadd.s32 %v158_v20, %v589_v4  ;;  %v254_v56 = vadd.s32 1, %v205_v21  ;;  %v301_v58 = vcvt.s32.f32 %v252_v22  ;;  %v397_v59 = vmul.f32 %v348_v32, %v299_v24  ;;  %v352_v22 = vld [vmem:[#allocation2 + $0x88] sm:$0xff] }
  0x36   :  { %v444_v60 = vmul.f32 %v395_v25, %v395_v25  ;;  %v490_v61 = vadd.f32 %v489_v52, %v442_v26  ;;  %v62_v62 = vadd.s32 192, %v585_v1  ;;  %v161_v63 = vmul.u32 128, %v60_v28 }
  0x37   :  { %v208_v0 = vadd.s32 %v159_v29, %v589_v4  ;;  %v255_v2 = vadd.s32 1, %v206_v30  ;;  %v302_v5 = vcvt.s32.f32 %v253_v31  ;;  %v398_v6 = vmul.f32 %v349_v57, %v300_v33  ;;  %v353_v31 = vld [vmem:[#allocation2 + $0x90] sm:$0xff] }
  0x38   :  { %v445_v7 = vmul.f32 %v396_v34, %v396_v34  ;;  %v491_v8 = vadd.f32 %v490_v61, %v443_v51  ;;  %v63_v9 = vadd.s32 200, %v585_v1  ;;  %v162_v10 = vmul.u32 128, %v61_v53 }
  0x39   :  { %v209_v11 = vadd.s32 %v160_v54, %v589_v4  ;;  %v256_v12 = vadd.s32 1, %v207_v55  ;;  %v303_v14 = vcvt.s32.f32 %v254_v56  ;;  %v399_v15 = vmul.f32 %v350_v3, %v301_v58  ;;  %v354_v56 = vld [vmem:[#allocation2 + $0x98] sm:$0xff] }
  0x3a   :  { %v446_v16 = vmul.f32 %v397_v59, %v397_v59  ;;  %v492_v17 = vadd.f32 %v491_v8, %v444_v60  ;;  %v64_v18 = vadd.s32 208, %v585_v1  ;;  %v163_v19 = vmul.u32 128, %v62_v62 }
  0x3b   :  { %v210_v20 = vadd.s32 %v161_v63, %v589_v4  ;;  %v257_v21 = vadd.s32 1, %v208_v0  ;;  %v304_v23 = vcvt.s32.f32 %v255_v2  ;;  %v400_v24 = vmul.f32 %v351_v13, %v302_v5  ;;  %v355_v2 = vld [vmem:[#allocation2 + $0xa0] sm:$0xff] }
  0x3c   :  { %v447_v25 = vmul.f32 %v398_v6, %v398_v6  ;;  %v493_v26 = vadd.f32 %v492_v17, %v445_v7  ;;  %v65_v27 = vadd.s32 216, %v585_v1  ;;  %v164_v28 = vmul.u32 128, %v63_v9 }
  0x3d   :  { %v211_v29 = vadd.s32 %v162_v10, %v589_v4  ;;  %v258_v30 = vadd.s32 1, %v209_v11  ;;  %v305_v32 = vcvt.s32.f32 %v256_v12  ;;  %v401_v33 = vmul.f32 %v352_v22, %v303_v14  ;;  %v356_v12 = vld [vmem:[#allocation2 + $0xa8] sm:$0xff] }
  0x3e   :  { %v448_v34 = vmul.f32 %v399_v15, %v399_v15  ;;  %v494_v51 = vadd.f32 %v493_v26, %v446_v16  ;;  %v66_v52 = vadd.s32 224, %v585_v1  ;;  %v165_v53 = vmul.u32 128, %v64_v18 }
  0x3f   :  { %v212_v54 = vadd.s32 %v163_v19, %v589_v4  ;;  %v259_v55 = vadd.s32 1, %v210_v20  ;;  %v306_v57 = vcvt.s32.f32 %v257_v21  ;;  %v402_v58 = vmul.f32 %v353_v31, %v304_v23  ;;  %v357_v21 = vld [vmem:[#allocation2 + $0xb0] sm:$0xff] }
  0x40   :  { %v449_v59 = vmul.f32 %v400_v24, %v400_v24  ;;  %v495_v60 = vadd.f32 %v494_v51, %v447_v25  ;;  %v67_v61 = vadd.s32 232, %v585_v1  ;;  %v166_v62 = vmul.u32 128, %v65_v27 }
  0x41   :  { %v213_v63 = vadd.s32 %v164_v28, %v589_v4  ;;  %v260_v0 = vadd.s32 1, %v211_v29  ;;  %v307_v3 = vcvt.s32.f32 %v258_v30  ;;  %v403_v5 = vmul.f32 %v354_v56, %v305_v32  ;;  %v358_v30 = vld [vmem:[#allocation2 + $0xb8] sm:$0xff] }
  0x42   :  { %v450_v6 = vmul.f32 %v401_v33, %v401_v33  ;;  %v496_v7 = vadd.f32 %v495_v60, %v448_v34  ;;  %v68_v8 = vadd.s32 240, %v585_v1  ;;  %v167_v9 = vmul.u32 128, %v66_v52 }
  0x43   :  { %v214_v10 = vadd.s32 %v165_v53, %v589_v4  ;;  %v261_v11 = vadd.s32 1, %v212_v54  ;;  %v308_v13 = vcvt.s32.f32 %v259_v55  ;;  %v404_v14 = vmul.f32 %v355_v2, %v306_v57  ;;  %v359_v54 = vld [vmem:[#allocation2 + $0xc0] sm:$0xff] }
  0x44   :  { %v451_v15 = vmul.f32 %v402_v58, %v402_v58  ;;  %v497_v16 = vadd.f32 %v496_v7, %v449_v59  ;;  %v69_v17 = vadd.s32 248, %v585_v1  ;;  %v168_v18 = vmul.u32 128, %v67_v61  ;;  %v360_v61 = vld [vmem:[#allocation2 + $0xc8] sm:$0xff] }
  0x45   :  { %v215_v19 = vadd.s32 %v166_v62, %v589_v4  ;;  %v262_v20 = vadd.s32 1, %v213_v63  ;;  %v309_v22 = vcvt.s32.f32 %v260_v0  ;;  %v405_v23 = vmul.f32 %v356_v12, %v307_v3 }
  0x46   :  { %v452_v24 = vmul.f32 %v403_v5, %v403_v5  ;;  %v498_v25 = vadd.f32 %v497_v16, %v450_v6  ;;  %v70_v26 = vadd.s32 256, %v585_v1  ;;  %v169_v27 = vmul.u32 128, %v68_v8  ;;  %v361_v6 = vld [vmem:[#allocation2 + $0xd0] sm:$0xff] }
  0x47   :  { %v216_v28 = vadd.s32 %v167_v9, %v589_v4  ;;  %v263_v29 = vadd.s32 1, %v214_v10  ;;  %v310_v31 = vcvt.s32.f32 %v261_v11  ;;  %v406_v32 = vmul.f32 %v357_v21, %v308_v13  ;;  %v362_v13 = vld [vmem:[#allocation2 + $0xd8] sm:$0xff] }
  0x48   :  { %v453_v33 = vmul.f32 %v404_v14, %v404_v14  ;;  %v499_v34 = vadd.f32 %v498_v25, %v451_v15  ;;  %v170_v51 = vmul.u32 128, %v69_v17  ;;  %v217_v52 = vadd.s32 %v168_v18, %v589_v4  ;;  %v364_v25 = vld [vmem:[#allocation2 + $0xe8] sm:$0xff] }
  0x49   :  { %v264_v53 = vadd.s32 1, %v215_v19  ;;  %v311_v55 = vcvt.s32.f32 %v262_v20  ;;  %v407_v56 = vmul.f32 %v358_v30, %v309_v22  ;;  %v454_v57 = vmul.f32 %v405_v23, %v405_v23  ;;  %v363_v19 = vld [vmem:[#allocation2 + $0xe0] sm:$0xff]  ;;  %v365_v30 = vld [vmem:[#allocation2 + $0xf0] sm:$0xff] }
  0x4a   :  { %v500_v58 = vadd.f32 %v499_v34, %v452_v24  ;;  %v171_v59 = vmul.u32 128, %v70_v26  ;;  %v218_v1 = vadd.s32 %v169_v27, %v589_v4  ;;  %v265_v60 = vadd.s32 1, %v216_v28 }
  0x4b   :  { %v312_v62 = vcvt.s32.f32 %v263_v29  ;;  %v408_v63 = vmul.f32 %v359_v54, %v310_v31  ;;  %v455_v0 = vmul.f32 %v406_v32, %v406_v32  ;;  %v219_v3 = vadd.s32 %v170_v51, %v589_v4 }
  0x4c   :  { %v501_v2 = vadd.f32 %v500_v58, %v453_v33  ;;  %v266_v5 = vadd.s32 1, %v217_v52  ;;  %v313_v7 = vcvt.s32.f32 %v264_v53  ;;  %v409_v8 = vmul.f32 %v360_v61, %v311_v55  ;;  %v366_v52 = vld [vmem:[#allocation2 + $0xf8] sm:$0xff]  ;;  %v367_v58 = vld [vmem:[#allocation2 + $0x100] sm:$0xff] }
  0x4d   :  { %v456_v9 = vmul.f32 %v407_v56, %v407_v56  ;;  %v220_v11 = vadd.s32 %v171_v59, %v589_v4  ;;  %v267_v12 = vadd.s32 1, %v218_v1  ;;  %v314_v14 = vcvt.s32.f32 %v265_v60 }
  0x4e   :  { %v502_v10 = vadd.f32 %v501_v2, %v454_v57  ;;  %v410_v15 = vmul.f32 %v361_v6, %v312_v62  ;;  %v457_v16 = vmul.f32 %v408_v63, %v408_v63  ;;  %v268_v18 = vadd.s32 1, %v219_v3  ;;  %v368_v62 = vld [vmem:[#allocation2 + $0x108] sm:$0xff] }
  0x4f   :  { %v315_v20 = vcvt.s32.f32 %v266_v5  ;;  %v411_v21 = vmul.f32 %v362_v13, %v313_v7  ;;  %v458_v22 = vmul.f32 %v409_v8, %v409_v8  ;;  %v269_v24 = vadd.s32 1, %v220_v11  ;;  %v369_v5 = vld [vmem:[#allocation2 + $0x110] sm:$0xff] }
  0x50   :  { %v503_v17 = vadd.f32 %v502_v10, %v455_v0  ;;  %v316_v26 = vcvt.s32.f32 %v267_v12  ;;  %v412_v27 = vmul.f32 %v363_v19, %v314_v14  ;;  %v459_v28 = vmul.f32 %v410_v15, %v410_v15  ;;  %v370_v10 = vld [vmem:[#allocation2 + $0x118] sm:$0xff]  ;;  %v371_v15 = vld [vmem:[#allocation2 + $0x120] sm:$0xff] }
  0x51   :  { %v270_v4 = vadd.s32 1, %v606_v35  ;;  %v317_v31 = vcvt.s32.f32 %v268_v18  ;;  %v413_v32 = vmul.f32 %v364_v25, %v315_v20  ;;  %v460_v33 = vmul.f32 %v411_v21, %v411_v21  ;;  %v372_v20 = vld [vmem:[#allocation2 + $0x128] sm:$0xff]  ;;  %v373_v25 = vld [vmem:[#allocation2 + $0x130] sm:$0xff] }
  0x52   :  { %v504_v23 = vadd.f32 %v503_v17, %v456_v9  ;;  %v271_v51 = vadd.s32 1, %v609_v36  ;;  %v318_v53 = vcvt.s32.f32 %v269_v24  ;;  %v414_v54 = vmul.f32 %v365_v30, %v316_v26 }
  0x53   :  { %v461_v55 = vmul.f32 %v412_v27, %v412_v27  ;;  %v272_v57 = vadd.s32 1, %v612_v37  ;;  %v319_v59 = vcvt.s32.f32 %v270_v4  ;;  %v415_v1 = vmul.f32 %v366_v52, %v317_v31  ;;  %v374_v4 = vld [vmem:[#allocation2 + $0x138] sm:$0xff] }
  0x54   :  { %v505_v29 = vadd.f32 %v504_v23, %v457_v16  ;;  %v462_v60 = vmul.f32 %v413_v32, %v413_v32  ;;  %v273_v35 = vadd.s32 1, %v615_v38  ;;  %v320_v63 = vcvt.s32.f32 %v271_v51 }
  0x55   :  { %v416_v0 = vmul.f32 %v367_v58, %v318_v53  ;;  %v463_v2 = vmul.f32 %v414_v54, %v414_v54  ;;  %v274_v36 = vadd.s32 1, %v618_v39  ;;  %v321_v6 = vcvt.s32.f32 %v272_v57 }
  0x56   :  { %v506_v34 = vadd.f32 %v505_v29, %v458_v22  ;;  %v417_v7 = vmul.f32 %v368_v62, %v319_v59  ;;  %v464_v8 = vmul.f32 %v415_v1, %v415_v1  ;;  %v275_v37 = vadd.s32 1, %v621_v40  ;;  %v377_v1 = vld [vmem:[#allocation2 + $0x150] sm:$0xff] }
  0x57   :  { %v322_v11 = vcvt.s32.f32 %v273_v35  ;;  %v418_v12 = vmul.f32 %v369_v5, %v320_v63  ;;  %v465_v13 = vmul.f32 %v416_v0, %v416_v0  ;;  %v276_v38 = vadd.s32 1, %v624_v41  ;;  %v378_v63 = vld [vmem:[#allocation2 + $0x158] sm:$0xff]  ;;  %v379_v5 = vld [vmem:[#allocation2 + $0x160] sm:$0xff] }
  0x58   :  { %v507_v56 = vadd.f32 %v506_v34, %v459_v28  ;;  %v323_v16 = vcvt.s32.f32 %v274_v36  ;;  %v419_v17 = vmul.f32 %v370_v10, %v321_v6  ;;  %v466_v18 = vmul.f32 %v417_v7, %v417_v7  ;;  %v375_v34 = vld [vmem:[#allocation2 + $0x140] sm:$0xff] }
  0x59   :  { %v277_v39 = vadd.s32 1, %v627_v42  ;;  %v324_v21 = vcvt.s32.f32 %v275_v37  ;;  %v420_v22 = vmul.f32 %v371_v15, %v322_v11  ;;  %v467_v23 = vmul.f32 %v418_v12, %v418_v12  ;;  %v380_v37 = vld [vmem:[#allocation2 + $0x168] sm:$0xff] }
  0x5a   :  { %v508_v61 = vadd.f32 %v507_v56, %v460_v33  ;;  %v278_v40 = vadd.s32 1, %v630_v43  ;;  %v325_v26 = vcvt.s32.f32 %v276_v38  ;;  %v421_v27 = vmul.f32 %v372_v20, %v323_v16  ;;  %v383_v20 = vld [vmem:[#allocation2 + $0x180] sm:$0xff] }
  0x5b   :  { %v468_v28 = vmul.f32 %v419_v17, %v419_v17  ;;  %v279_v41 = vadd.s32 1, %v633_v44  ;;  %v326_v30 = vcvt.s32.f32 %v277_v39  ;;  %v422_v31 = vmul.f32 %v373_v25, %v324_v21  ;;  %v382_v17 = vld [vmem:[#allocation2 + $0x178] sm:$0xff] }
  0x5c   :  { %v509_v3 = vadd.f32 %v508_v61, %v461_v55  ;;  %v469_v32 = vmul.f32 %v420_v22, %v420_v22  ;;  %v280_v42 = vadd.s32 1, %v636_v45  ;;  %v327_v51 = vcvt.s32.f32 %v278_v40  ;;  %v376_v55 = vld [vmem:[#allocation2 + $0x148] sm:$0xff] }
  0x5d   :  { %v423_v52 = vmul.f32 %v374_v4, %v325_v26  ;;  %v470_v53 = vmul.f32 %v421_v27, %v421_v27  ;;  %v281_v43 = vadd.s32 1, %v639_v46  ;;  %v328_v56 = vcvt.s32.f32 %v279_v41 }
  0x5e   :  { %v510_v9 = vadd.f32 %v509_v3, %v462_v60  ;;  %v424_v57 = vmul.f32 %v375_v34, %v326_v30  ;;  %v471_v58 = vmul.f32 %v422_v31, %v422_v31  ;;  %v282_v44 = vadd.s32 1, %v642_v47 }
  0x5f   :  { %v329_v60 = vcvt.s32.f32 %v280_v42  ;;  %v425_v61 = vmul.f32 %v376_v55, %v327_v51  ;;  %v472_v35 = vmul.f32 %v423_v52, %v423_v52  ;;  %v283_v45 = vadd.s32 1, %v645_v48  ;;  %v381_v48 = vld [vmem:[#allocation2 + $0x170] sm:$0xff] }
  0x60   :  { %v511_v14 = vadd.f32 %v510_v9, %v463_v2  ;;  %v330_v0 = vcvt.s32.f32 %v281_v43  ;;  %v426_v2 = vmul.f32 %v377_v1, %v328_v56  ;;  %v473_v3 = vmul.f32 %v424_v57, %v424_v57 }
  0x61   :  { %v284_v46 = vadd.s32 1, %v648_v49  ;;  %v331_v6 = vcvt.s32.f32 %v282_v44  ;;  %v427_v7 = vmul.f32 %v378_v63, %v329_v60  ;;  %v285_v47 = vadd.s32 1, %v651_v50 }
  0x62   :  { %v512_v19 = vadd.f32 %v511_v14, %v464_v8  ;;  %v474_v8 = vmul.f32 %v425_v61, %v425_v61  ;;  %v332_v10 = vcvt.s32.f32 %v283_v45  ;;  %v428_v11 = vmul.f32 %v379_v5, %v330_v0 }
  0x63   :  { %v475_v12 = vmul.f32 %v426_v2, %v426_v2  ;;  %v333_v14 = vcvt.s32.f32 %v284_v46  ;;  %v429_v38 = vmul.f32 %v380_v37, %v331_v6  ;;  %v476_v15 = vmul.f32 %v427_v7, %v427_v7 }
  0x64   :  { %v513_v24 = vadd.f32 %v512_v19, %v465_v13  ;;  %v430_v49 = vmul.f32 %v381_v48, %v332_v10  ;;  %v477_v19 = vmul.f32 %v428_v11, %v428_v11 }
  0x65   :  { %v431_v21 = vmul.f32 %v382_v17, %v333_v14  ;;  %v478_v22 = vmul.f32 %v429_v38, %v429_v38 }
  0x66   :  { %v514_v29 = vadd.f32 %v513_v24, %v466_v18  ;;  %v334_v18 = vcvt.s32.f32 %v285_v47  ;;  %v479_v24 = vmul.f32 %v430_v49, %v430_v49 }
  0x67   :  { %v480_v25 = vmul.f32 %v431_v21, %v431_v21 }
  0x68   :  { %v515_v33 = vadd.f32 %v514_v29, %v467_v23  ;;  %v432_v50 = vmul.f32 %v383_v20, %v334_v18 }
  0x6a   :  { %v516_v54 = vadd.f32 %v515_v33, %v468_v28  ;;  %v481_v27 = vmul.f32 %v432_v50, %v432_v50 }
  0x6c   :  { %v517_v59 = vadd.f32 %v516_v54, %v469_v32 }
  0x6e   :  { %v518_v62 = vadd.f32 %v517_v59, %v470_v53 }
  0x70   :  { %v519_v36 = vadd.f32 %v518_v62, %v471_v58 }
  0x72   :  { %v520_v9 = vadd.f32 %v519_v36, %v472_v35 }
  0x74   :  { %v521_v13 = vadd.f32 %v520_v9, %v473_v3 }
  0x76   :  { %v522_v16 = vadd.f32 %v521_v13, %v474_v8 }
  0x78   :  { %v523_v39 = vadd.f32 %v522_v16, %v475_v12 }
  0x7a   :  { %v524_v23 = vadd.f32 %v523_v39, %v476_v15 }
  0x7c   :  { %v525_v40 = vadd.f32 %v524_v23, %v477_v19 }
  0x7e   :  { %v526_v26 = vadd.f32 %v525_v40, %v478_v22 }
  0x80   :  { %v527_v28 = vadd.f32 %v526_v26, %v479_v24 }
  0x82   :  { %v528_v29 = vadd.f32 %v527_v28, %v480_v25 }
  0x84   :  { %v529_v41 = vadd.f32 %v528_v29, %v481_v27 }
  0x86   :  { %533 = vst [vmem:[%s739_s1] sm:$0xff] %v529_v41 }
  0x87   :  { %538 = vsyncpa [#allocation3], 1 }

</bundles_post_ra>
